<compile_context>
chip_gen: v7x
topology: tpu7x:2x2x1
jax: 0.10.0
libtpu: 0.0.40
codegen_flags: <defaults>
</compile_context>

<pallas_src>
import functools

import jax
import jax.numpy as jnp
from jax.experimental import pallas as pl
from jax.experimental.pallas import tpu as pltpu

_LANE = 128
_SUBLANE = 8
# Fully-resident weights must fit comfortably in VMEM on the smallest-VMEM part
# (v7x: 64 MiB physical per TensorCore).
_MAX_RESIDENT_WEIGHT_BYTES = 48 * 1024 * 1024


def _round_up(n, m):
    return (n + m - 1) // m * m


def _pad2(a, rows, cols):
    return jnp.pad(a, ((0, rows - a.shape[0]), (0, cols - a.shape[1])))


def _mlp5_kernel(x_ref, w1_ref, b1_ref, w2_ref, b2_ref,
                 w3_ref, b3_ref, w4_ref, b4_ref, o_ref):
    cdt = w1_ref.dtype  # MXU operand dtype; accumulation stays f32.
    # fc1 + ReLU
    h = jnp.dot(x_ref[...].astype(cdt), w1_ref[...],
                preferred_element_type=jnp.float32)
    h = jnp.maximum(h + b1_ref[...], 0.0)
    # fc2 + ReLU
    h = jnp.dot(h.astype(cdt), w2_ref[...], preferred_element_type=jnp.float32)
    h = jnp.maximum(h + b2_ref[...], 0.0)
    # fc3 + ReLU
    h = jnp.dot(h.astype(cdt), w3_ref[...], preferred_element_type=jnp.float32)
    h = jnp.maximum(h + b3_ref[...], 0.0)
    # fc4 (logits, no activation)
    o = jnp.dot(h.astype(cdt), w4_ref[...],
                preferred_element_type=jnp.float32) + b4_ref[...]
    o_ref[...] = o.astype(o_ref.dtype)


def prepare_params(params, compute_dtype=jnp.bfloat16):
    """One-time prep: zero-pad each weight to (in%128==0, out%128==0), each bias
    to (1, out%128==0), cast weights to the MXU operand dtype (biases stay f32,
    they are added to the f32 accumulator).  Zero padding is exact: padded
    hidden columns get zero weight + zero bias -> ReLU(0)=0 -> zero rows of the
    next weight contribute nothing; padded output columns are sliced off.
    Returns (padded_param_tuple, num_classes)."""
    (w1, b1), (w2, b2), (w3, b3), (w4, b4) = params
    num_classes = w4.shape[1]
    Dp = _round_up(w1.shape[0], _LANE)
    H1p = _round_up(w1.shape[1], _LANE)
    H2p = _round_up(w2.shape[1], _LANE)
    H3p = _round_up(w3.shape[1], _LANE)
    Cp = _round_up(num_classes, _LANE)

    def wp(w, r, c):
        return _pad2(w, r, c).astype(compute_dtype)

    def bp(b, c):
        return _pad2(b.reshape(1, -1), 1, c).astype(jnp.float32)

    padded = (wp(w1, Dp, H1p), bp(b1, H1p),
              wp(w2, H1p, H2p), bp(b2, H2p),
              wp(w3, H2p, H3p), bp(b3, H3p),
              wp(w4, H3p, Cp), bp(b4, Cp))

    resident = sum(int(a.size) * a.dtype.itemsize for a in padded)
    if resident > _MAX_RESIDENT_WEIGHT_BYTES:
        # TODO(synk): switch to a K/N-tiled reduction-grid kernel here.
        raise ValueError(
            f"Padded weights need {resident / 2**20:.1f} MiB of resident VMEM; "
            f"this fully-resident kernel is only safe up to "
            f"{_MAX_RESIDENT_WEIGHT_BYTES / 2**20:.0f} MiB (v7x budget).")
    return padded, num_classes


def _batch_tiling(B, Dp, x_itemsize):
    """Pick (padded_batch, batch_tile).  Tiles are multiples of 8 sublanes; the
    grid has >=2 programs once the padded batch reaches 16 rows (v7x 2-TC
    sharding); tiles grow up to 512 rows for large batches (v5e/v6e per-step
    amortization) but stay under ~4 MiB per double-buffered x tile; round-up
    waste is bounded by 8*(grid-1) rows instead of blowing up to 2x."""
    Bp = _round_up(max(B, 1), _SUBLANE)
    if Bp <= _SUBLANE:
        return Bp, Bp
    bm_cap = min(512, max(_SUBLANE,
                          (4 * 1024 * 1024 // max(Dp * x_itemsize, 1))
                          // _SUBLANE * _SUBLANE))
    grid = max(2, pl.cdiv(Bp, bm_cap))
    bm = _round_up(pl.cdiv(Bp, grid), _SUBLANE)
    return grid * bm, bm


@functools.partial(jax.jit, static_argnames=("num_classes",))
def mlp5_forward(x, padded_params, num_classes):
    """x: [B, C, H, W] float32 (NCHW).  padded_params: output of
    prepare_params().  Returns logits [B, num_classes] float32."""
    (w1_p, b1_p, w2_p, b2_p, w3_p, b3_p, w4_p, b4_p) = padded_params
    B = x.shape[0]
    x_flat = x.reshape(B, -1)                 # same as torch x.view(B, -1)
    D = x_flat.shape[1]
    Dp, H1p = w1_p.shape
    H2p, H3p, Cp = w2_p.shape[1], w3_p.shape[1], w4_p.shape[1]
    if D > Dp:
        raise ValueError(f"flattened input size {D} exceeds padded rows {Dp}")

    compute_dtype = w1_p.dtype
    cd_size = compute_dtype.itemsize
    Bp, bm = _batch_tiling(B, Dp, cd_size)
    x_p = _pad2(x_flat, Bp, Dp).astype(compute_dtype)

    # Advisory cost + explicit VMEM budget (weights x1 single-buffered,
    # x/out tiles x2 buffers, slack for in-kernel f32 activations).
    flops = 2 * Bp * (Dp * H1p + H1p * H2p + H2p * H3p + H3p * Cp)
    w_bytes = sum(int(a.size) * a.dtype.itemsize for a in padded_params)
    io_bytes = Bp * Dp * cd_size + Bp * Cp * 4 + w_bytes
    act_bytes = bm * max(H1p, H2p, H3p, Cp) * 4
    vmem_needed = (w_bytes + 2 * bm * Dp * cd_size + 2 * bm * Cp * 4
                   + 4 * act_bytes)
    vmem_limit = int(min(max(int(vmem_needed * 1.5), 16 * 2**20), 64 * 2**20))

    def resident(a):
        # Constant index_map -> fetched once; single-buffer so it does not pay
        # the default 2x double-buffer VMEM (matters on v7x's 64 MiB VMEM).
        return pl.BlockSpec(a.shape, lambda i: (0,) * a.ndim,
                            memory_space=pltpu.VMEM,
                            pipeline_mode=pl.Buffered(1))

    out_p = pl.pallas_call(
        _mlp5_kernel,
        out_shape=jax.ShapeDtypeStruct((Bp, Cp), jnp.float32),
        grid=(Bp // bm,),
        in_specs=[
            pl.BlockSpec((bm, Dp), lambda i: (i, 0), memory_space=pltpu.VMEM),
            resident(w1_p), resident(b1_p),
            resident(w2_p), resident(b2_p),
            resident(w3_p), resident(b3_p),
            resident(w4_p), resident(b4_p),
        ],
        out_specs=pl.BlockSpec((bm, Cp), lambda i: (i, 0),
                               memory_space=pltpu.VMEM),
        compiler_params=pltpu.CompilerParams(
            dimension_semantics=("parallel",),
            vmem_limit_bytes=vmem_limit),
        cost_estimate=pl.CostEstimate(flops=flops, transcendentals=0,
                                      bytes_accessed=io_bytes),
    )(x_p, w1_p, b1_p, w2_p, b2_p, w3_p, b3_p, w4_p, b4_p)

    return out_p[:B, :num_classes]


def init_params(key, input_size, hidden1, hidden2, hidden3, num_classes):
    """Deterministic init matching nn.Linear's U(-1/sqrt(fan_in), 1/sqrt(fan_in)).
    Weights are stored [in, out] (transpose of torch's [out, in])."""
    dims = [input_size, hidden1, hidden2, hidden3, num_classes]
    keys = jax.random.split(key, 8)
    params = []
    for layer in range(4):
        fan_in, fan_out = dims[layer], dims[layer + 1]
        bound = 1.0 / jnp.sqrt(jnp.float32(fan_in))
        w = jax.random.uniform(keys[2 * layer], (fan_in, fan_out),
                               jnp.float32, -bound, bound)
        b = jax.random.uniform(keys[2 * layer + 1], (1, fan_out),
                               jnp.float32, -bound, bound)
        params.append((w, b))
    return tuple(params)


if __name__ == "__main__":
    key = jax.random.PRNGKey(0)
    kx, kp = jax.random.split(key)

    # Small shapes consistent with the module: B=2, C=4, H=W=16 -> input=1024
    B, C, H, W = 2, 4, 16, 16
    input_size = C * H * W
    hidden1, hidden2, hidden3 = 32, 64, 32
    num_classes = 10

    x = jax.random.normal(kx, (B, C, H, W), jnp.float32)
    params = init_params(kp, input_size, hidden1, hidden2, hidden3, num_classes)

    # Reference check in plain JAX (same math as the PyTorch forward).
    (w1, b1), (w2, b2), (w3, b3), (w4, b4) = params
    r = x.reshape(B, -1)
    r = jnp.maximum(r @ w1 + b1, 0.0)
    r = jnp.maximum(r @ w2 + b2, 0.0)
    r = jnp.maximum(r @ w3 + b3, 0.0)
    ref = r @ w4 + b4

    # Exact-f32 operand path.
    padded_f32, nc = prepare_params(params, compute_dtype=jnp.float32)
    out_f32 = mlp5_forward(x, padded_f32, num_classes=nc)
    jax.block_until_ready(out_f32)
    assert out_f32.shape == (B, num_classes)
    assert jnp.allclose(out_f32, ref, atol=1e-3, rtol=1e-3)

    # Default bf16-operand path (f32 accumulation): looser tolerance.
    padded_bf16, nc = prepare_params(params)   # compute_dtype=bf16
    out_bf16 = mlp5_forward(x, padded_bf16, num_classes=nc)
    jax.block_until_ready(out_bf16)
    assert out_bf16.shape == (B, num_classes)
    assert jnp.allclose(out_bf16, ref, atol=3e-2, rtol=3e-2)

    print("KERNEL_OK")
</pallas_src>

<mosaic_0001>
module attributes {stable_mosaic.version = 11 : i64} {
  func.func @_mlp5_kernel(%arg0: i32, %arg1: memref<8x1024xf32, #tpu.memory_space<vmem>>, %arg2: memref<1024x128xf32, #tpu.memory_space<vmem>>, %arg3: memref<1x128xf32, #tpu.memory_space<vmem>>, %arg4: memref<128x128xf32, #tpu.memory_space<vmem>>, %arg5: memref<1x128xf32, #tpu.memory_space<vmem>>, %arg6: memref<128x128xf32, #tpu.memory_space<vmem>>, %arg7: memref<1x128xf32, #tpu.memory_space<vmem>>, %arg8: memref<128x128xf32, #tpu.memory_space<vmem>>, %arg9: memref<1x128xf32, #tpu.memory_space<vmem>>, %arg10: memref<8x128xf32, #tpu.memory_space<vmem>>) attributes {dimension_semantics = [#tpu.dimension_semantics<parallel>], iteration_bounds = array<i64: 1>, scalar_prefetch = 0 : i64, scratch_operands = 0 : i64, tpu.core_type = #tpu.core_type<tc>, window_params = [{transform_indices = @transform_0, window_bounds = array<i64: 8, 1024>}, {pipeline_mode = #tpu.pipeline_mode<synchronous>, transform_indices = @transform_1, window_bounds = array<i64: 1024, 128>}, {pipeline_mode = #tpu.pipeline_mode<synchronous>, transform_indices = @transform_2, window_bounds = array<i64: 1, 128>}, {pipeline_mode = #tpu.pipeline_mode<synchronous>, transform_indices = @transform_3, window_bounds = array<i64: 128, 128>}, {pipeline_mode = #tpu.pipeline_mode<synchronous>, transform_indices = @transform_4, window_bounds = array<i64: 1, 128>}, {pipeline_mode = #tpu.pipeline_mode<synchronous>, transform_indices = @transform_5, window_bounds = array<i64: 128, 128>}, {pipeline_mode = #tpu.pipeline_mode<synchronous>, transform_indices = @transform_6, window_bounds = array<i64: 1, 128>}, {pipeline_mode = #tpu.pipeline_mode<synchronous>, transform_indices = @transform_7, window_bounds = array<i64: 128, 128>}, {pipeline_mode = #tpu.pipeline_mode<synchronous>, transform_indices = @transform_8, window_bounds = array<i64: 1, 128>}, {transform_indices = @transform_9, window_bounds = array<i64: 8, 128>}]} {
    %c0 = arith.constant 0 : index
    %c0_0 = arith.constant 0 : index
    %0 = vector.load %arg1[%c0, %c0_0] : memref<8x1024xf32, #tpu.memory_space<vmem>>, vector<8x1024xf32>
    %c0_1 = arith.constant 0 : index
    %c0_2 = arith.constant 0 : index
    %1 = vector.load %arg2[%c0_1, %c0_2] : memref<1024x128xf32, #tpu.memory_space<vmem>>, vector<1024x128xf32>
    %cst = arith.constant dense<0.000000e+00> : vector<8x128xf32>
    %2 = tpu.matmul %0, %1, %cst {dimension_numbers = #tpu.dot_dimension_numbers<[1], [0], [0], [1], [0, 0, 1, 1], [], []>} : vector<8x1024xf32>, vector<1024x128xf32>, vector<8x128xf32> -> vector<8x128xf32>
    %c0_3 = arith.constant 0 : index
    %c0_4 = arith.constant 0 : index
    %3 = vector.load %arg3[%c0_3, %c0_4] : memref<1x128xf32, #tpu.memory_space<vmem>>, vector<1x128xf32>
    %4 = vector.broadcast %3 : vector<1x128xf32> to vector<8x128xf32>
    %5 = arith.addf %2, %4 : vector<8x128xf32>
    %cst_5 = arith.constant 0.000000e+00 : f32
    %6 = vector.broadcast %cst_5 : f32 to vector<8x128xf32>
    %7 = arith.maximumf %5, %6 : vector<8x128xf32>
    %c0_6 = arith.constant 0 : index
    %c0_7 = arith.constant 0 : index
    %8 = vector.load %arg4[%c0_6, %c0_7] : memref<128x128xf32, #tpu.memory_space<vmem>>, vector<128x128xf32>
    %cst_8 = arith.constant dense<0.000000e+00> : vector<8x128xf32>
    %9 = tpu.matmul %7, %8, %cst_8 {dimension_numbers = #tpu.dot_dimension_numbers<[1], [0], [0], [1], [0, 0, 1, 1], [], []>} : vector<8x128xf32>, vector<128x128xf32>, vector<8x128xf32> -> vector<8x128xf32>
    %c0_9 = arith.constant 0 : index
    %c0_10 = arith.constant 0 : index
    %10 = vector.load %arg5[%c0_9, %c0_10] : memref<1x128xf32, #tpu.memory_space<vmem>>, vector<1x128xf32>
    %11 = vector.broadcast %10 : vector<1x128xf32> to vector<8x128xf32>
    %12 = arith.addf %9, %11 : vector<8x128xf32>
    %cst_11 = arith.constant 0.000000e+00 : f32
    %13 = vector.broadcast %cst_11 : f32 to vector<8x128xf32>
    %14 = arith.maximumf %12, %13 : vector<8x128xf32>
    %c0_12 = arith.constant 0 : index
    %c0_13 = arith.constant 0 : index
    %15 = vector.load %arg6[%c0_12, %c0_13] : memref<128x128xf32, #tpu.memory_space<vmem>>, vector<128x128xf32>
    %cst_14 = arith.constant dense<0.000000e+00> : vector<8x128xf32>
    %16 = tpu.matmul %14, %15, %cst_14 {dimension_numbers = #tpu.dot_dimension_numbers<[1], [0], [0], [1], [0, 0, 1, 1], [], []>} : vector<8x128xf32>, vector<128x128xf32>, vector<8x128xf32> -> vector<8x128xf32>
    %c0_15 = arith.constant 0 : index
    %c0_16 = arith.constant 0 : index
    %17 = vector.load %arg7[%c0_15, %c0_16] : memref<1x128xf32, #tpu.memory_space<vmem>>, vector<1x128xf32>
    %18 = vector.broadcast %17 : vector<1x128xf32> to vector<8x128xf32>
    %19 = arith.addf %16, %18 : vector<8x128xf32>
    %cst_17 = arith.constant 0.000000e+00 : f32
    %20 = vector.broadcast %cst_17 : f32 to vector<8x128xf32>
    %21 = arith.maximumf %19, %20 : vector<8x128xf32>
    %c0_18 = arith.constant 0 : index
    %c0_19 = arith.constant 0 : index
    %22 = vector.load %arg8[%c0_18, %c0_19] : memref<128x128xf32, #tpu.memory_space<vmem>>, vector<128x128xf32>
    %cst_20 = arith.constant dense<0.000000e+00> : vector<8x128xf32>
    %23 = tpu.matmul %21, %22, %cst_20 {dimension_numbers = #tpu.dot_dimension_numbers<[1], [0], [0], [1], [0, 0, 1, 1], [], []>} : vector<8x128xf32>, vector<128x128xf32>, vector<8x128xf32> -> vector<8x128xf32>
    %c0_21 = arith.constant 0 : index
    %c0_22 = arith.constant 0 : index
    %24 = vector.load %arg9[%c0_21, %c0_22] : memref<1x128xf32, #tpu.memory_space<vmem>>, vector<1x128xf32>
    %25 = vector.broadcast %24 : vector<1x128xf32> to vector<8x128xf32>
    %26 = arith.addf %23, %25 : vector<8x128xf32>
    %c0_23 = arith.constant 0 : index
    %c0_24 = arith.constant 0 : index
    %27 = vector.load %arg10[%c0_23, %c0_24] : memref<8x128xf32, #tpu.memory_space<vmem>>, vector<8x128xf32>
    tpu.vector_store %arg10[%c0_23, %c0_24], %26 {strides = array<i32>} : memref<8x128xf32, #tpu.memory_space<vmem>>, vector<8x128xf32>,
    return
  }
  func.func @transform_0(%arg0: i32) -> (i32, i32) {
    %c0_i32 = arith.constant 0 : i32
    %c0_i32_0 = arith.constant 0 : i32
    return %arg0, %c0_i32 : i32, i32
  }
  func.func @transform_1(%arg0: i32) -> (i32, i32) {
    %c0_i32 = arith.constant 0 : i32
    %c0_i32_0 = arith.constant 0 : i32
    %c0_i32_1 = arith.constant 0 : i32
    return %c0_i32, %c0_i32_0 : i32, i32
  }
  func.func @transform_2(%arg0: i32) -> (i32, i32) {
    %c0_i32 = arith.constant 0 : i32
    %c0_i32_0 = arith.constant 0 : i32
    %c0_i32_1 = arith.constant 0 : i32
    return %c0_i32, %c0_i32_0 : i32, i32
  }
  func.func @transform_3(%arg0: i32) -> (i32, i32) {
    %c0_i32 = arith.constant 0 : i32
    %c0_i32_0 = arith.constant 0 : i32
    %c0_i32_1 = arith.constant 0 : i32
    return %c0_i32, %c0_i32_0 : i32, i32
  }
  func.func @transform_4(%arg0: i32) -> (i32, i32) {
    %c0_i32 = arith.constant 0 : i32
    %c0_i32_0 = arith.constant 0 : i32
    %c0_i32_1 = arith.constant 0 : i32
    return %c0_i32, %c0_i32_0 : i32, i32
  }
  func.func @transform_5(%arg0: i32) -> (i32, i32) {
    %c0_i32 = arith.constant 0 : i32
    %c0_i32_0 = arith.constant 0 : i32
    %c0_i32_1 = arith.constant 0 : i32
    return %c0_i32, %c0_i32_0 : i32, i32
  }
  func.func @transform_6(%arg0: i32) -> (i32, i32) {
    %c0_i32 = arith.constant 0 : i32
    %c0_i32_0 = arith.constant 0 : i32
    %c0_i32_1 = arith.constant 0 : i32
    return %c0_i32, %c0_i32_0 : i32, i32
  }
  func.func @transform_7(%arg0: i32) -> (i32, i32) {
    %c0_i32 = arith.constant 0 : i32
    %c0_i32_0 = arith.constant 0 : i32
    %c0_i32_1 = arith.constant 0 : i32
    return %c0_i32, %c0_i32_0 : i32, i32
  }
  func.func @transform_8(%arg0: i32) -> (i32, i32) {
    %c0_i32 = arith.constant 0 : i32
    %c0_i32_0 = arith.constant 0 : i32
    %c0_i32_1 = arith.constant 0 : i32
    return %c0_i32, %c0_i32_0 : i32, i32
  }
  func.func @transform_9(%arg0: i32) -> (i32, i32) {
    %c0_i32 = arith.constant 0 : i32
    %c0_i32_0 = arith.constant 0 : i32
    return %arg0, %c0_i32 : i32, i32
  }
}

</mosaic_0001>

<bundles_post_ra>
// kernel: mlp5_forward.1
= control target key start
LH: loop header
LB: loop body
LE: loop exit
PB: predicated region body
PF: predicated region fallthrough
CT: control target
= control target key end

     0   :  { %14 = vsyncpa [#allocation3], 0  ;;  %s1587_s0 = inlined_call_operand.vmem [shape: f32[8,1024], index: 0, kind: input, shape index: {}]   ;;  %s1588_s1 = inlined_call_operand.hbm [shape: f32[1024,128], index: 1, kind: input, shape index: {}]   ;;  %s1589_s2 = inlined_call_operand.vmem [shape: f32[1,128], index: 2, kind: input, shape index: {}]   ;;  %s1590_s3 = inlined_call_operand.vmem [shape: f32[128,128], index: 3, kind: input, shape index: {}]   ;;  %s1591_s4 = inlined_call_operand.vmem [shape: f32[1,128], index: 4, kind: input, shape index: {}]   ;;  %s1592_s5 = inlined_call_operand.hbm [shape: f32[128,128], index: 5, kind: input, shape index: {}]   ;;  %s1593_s6 = inlined_call_operand.vmem [shape: f32[1,128], index: 6, kind: input, shape index: {}]   ;;  %s1594_s7 = inlined_call_operand.hbm [shape: f32[128,128], index: 7, kind: input, shape index: {}]   ;;  %s1595_s8 = inlined_call_operand.vmem [shape: f32[1,128], index: 8, kind: input, shape index: {}]   ;;  %s1596_s9 = inlined_call_operand.vmem [shape: f32[8,128], index: 9, kind: output, shape index: {}]  }
   0x1   :  { %15 = vsyncpa [#allocation5], 0  ;;  %s1363_s30 = smov [#allocation4]   ;;  %s1364_s11 = smov [#allocation2]  }
   0x2   :  { %s41_s10 = sshll.u32 %s1363_s30, 4  ;;  %s23_s12 = sshll.u32 %s1364_s11, 4  ;;  %s42_s10 = int_to_ptr.vmem [resolvable:$true] %s41_s10  ;;  %s1421_s12 = int_to_ptr.vmem [resolvable:$true] %s23_s12 }
   0x3   :  { %s1293_s15 = scalar_lea.hbm %s1592_s5, 2048 }
   0x4   :  { %p1294_p0 = scmp.ne.s32.totalorder %s1592_s5, %s1293_s15  ;;  %p1297_p1 = scmp.lt.u32.totalorder %s1293_s15, %s1592_s5 }
   0x6   :  { %p1299_p2 = pnand %p1297_p1, %p1294_p0 }
   0x8   :  { %1302 = shalt.err (!%p1299_p2)
}
   0x9   :  { %s1303_s20 = scalar_lea.vmem %s42_s10, 2048  ;;  %p1308_p4 = scmp.lt.s32.totalorder %s42_s10, %s42_s10 }
   0xa   :  { %p1304_p3 = scmp.ne.s32.totalorder %s42_s10, %s1303_s20  ;;  %p1309_p5 = scmp.lt.s32.totalorder %s1303_s20, %s1303_s20 }
   0xc   :  { %p1310_p6 = por %p1309_p5, %p1308_p4 }
   0xe   :  { %p1311_p7 = pnand %p1310_p6, %p1304_p3 }
  0x10   :  { %1314 = shalt.err (!%p1311_p7)
}
  0x11   :  { %s1365_s21 = smov 128   ;;  %s1366_s22 = smov 8  }
  0x12   :  { %47 = dma.hbm_to_vmem [thread:$0]  %s1592_s5, 2048, %s42_s10, [#allocation5], %s1365_s21, %s1365_s21, %s1366_s22  }
  0x13   :  { %s1315_s27 = scalar_lea.hbm %s1588_s1, 16384 }
  0x14   :  { %p1316_p8 = scmp.ne.s32.totalorder %s1588_s1, %s1315_s27  ;;  %p1319_p9 = scmp.lt.u32.totalorder %s1315_s27, %s1588_s1 }
  0x16   :  { %p1321_p10 = pnand %p1319_p9, %p1316_p8 }
  0x18   :  { %1324 = shalt.err (!%p1321_p10)
}
  0x19   :  { %s1325_s13 = scalar_lea.vmem %s1421_s12, 16384  ;;  %p1330_p12 = scmp.lt.s32.totalorder %s1421_s12, %s1421_s12 }
  0x1a   :  { %p1326_p11 = scmp.ne.s32.totalorder %s1421_s12, %s1325_s13  ;;  %p1331_p13 = scmp.lt.s32.totalorder %s1325_s13, %s1325_s13 }
  0x1c   :  { %p1332_p0 = por %p1331_p13, %p1330_p12 }
  0x1e   :  { %p1333_p1 = pnand %p1332_p0, %p1326_p11 }
  0x20   :  { %1336 = shalt.err (!%p1333_p1)
}
  0x21   :  { %29 = dma.hbm_to_vmem [thread:$0]  %s1588_s1, 16384, %s1421_s12, [#allocation3], %s1365_s21, %s1365_s21, %s1366_s22  }
  0x22   :  { %s1367_s14 = smov [#allocation6]   ;;  %s1337_s18 = scalar_lea.hbm %s1594_s7, 2048 }
  0x23   :  { %s55_s15 = sshll.u32 %s1367_s14, 4  ;;  %p1338_p2 = scmp.ne.s32.totalorder %s1594_s7, %s1337_s18  ;;  %s56_s15 = int_to_ptr.vmem [resolvable:$true] %s55_s15 }
  0x24   :  { %p1341_p3 = scmp.lt.u32.totalorder %s1337_s18, %s1594_s7 }
  0x26   :  { %p1343_p4 = pnand %p1341_p3, %p1338_p2 }
  0x28   :  { %1346 = shalt.err (!%p1343_p4)
}
  0x29   :  { %s1347_s25 = scalar_lea.vmem %s56_s15, 2048  ;;  %p1352_p6 = scmp.lt.s32.totalorder %s56_s15, %s56_s15 }
  0x2a   :  { %p1348_p5 = scmp.ne.s32.totalorder %s56_s15, %s1347_s25  ;;  %p1353_p7 = scmp.lt.s32.totalorder %s1347_s25, %s1347_s25 }
  0x2c   :  { %p1354_p8 = por %p1353_p7, %p1352_p6 }
  0x2e   :  { %p1355_p9 = pnand %p1354_p8, %p1348_p5 }
  0x30   :  { %1358 = shalt.err (!%p1355_p9)
}
  0x31   :  { %61 = dma.hbm_to_vmem [thread:$0]  %s1594_s7, 2048, %s56_s15, [#allocation5], %s1365_s21, %s1365_s21, %s1366_s22  }
  0x32   :  { %1359 = dma.done.wait [#allocation3], 16384  }
  0x33   :  { %1360 = vsyncadd [#allocation3], 4294950912 }
  0x34   :  { %1361 = dma.done.wait [#allocation5], 4096  }
  0x35   :  { %1362 = vsyncadd [#allocation5], 4294963200  ;;  %v97_v0 = vld [vmem:[#allocation2 + $0x80] sm:$0xff]  ;;  %v98_v1 = vld [vmem:[#allocation2 + $0x88] sm:$0xff]  ;;  %vm1369_vm0 = vmmov 0  }
  0x36   :  { %v81_v2 = vld [vmem:[#allocation2] sm:$0xff]  ;;  %v1085_v3 = vpack.c.bf16 %v98_v1, %v97_v0  ;;  %v82_v4 = vld [vmem:[#allocation2 + $0x8] sm:$0xff]  ;;  %v99_v11 = vld [vmem:[#allocation2 + $0x90] sm:$0xff] }
  0x37   :  { %v129_v5 = vld [vmem:[#allocation2 + $0x180] sm:$0xff]  ;;  %v130_v6 = vld [vmem:[#allocation2 + $0x188] sm:$0xff]  ;;  %v1087_v7 = vpack.c.bf16 %v82_v4, %v81_v2  ;;  %v100_v13 = vld [vmem:[#allocation2 + $0x98] sm:$0xff] }
  0x38   :  { %v1117_v8 = vpack.c.bf16 %v130_v6, %v129_v5  ;;  %v113_v9 = vld [vmem:[#allocation2 + $0x100] sm:$0xff]  ;;  %v114_v10 = vld [vmem:[#allocation2 + $0x108] sm:$0xff]  ;;  %1086 = vmatprep.subr.bf16.mxu0 %v1085_v3  ;;  %v83_v14 = vld [vmem:[#allocation2 + $0x10] sm:$0xff]  ;;  %v1089_v16 = vpack.c.bf16 %v100_v13, %v99_v11 }
  0x39   :  { %v1119_v12 = vpack.c.bf16 %v114_v10, %v113_v9  ;;  %v84_v15 = vld [vmem:[#allocation2 + $0x18] sm:$0xff]  ;;  %1088 = vmatpush3.bf16.msra.mxu0 %v1087_v7  ;;  %v131_v18 = vld [vmem:[#allocation2 + $0x190] sm:$0xff]  ;;  %v101_v23 = vld [vmem:[#allocation2 + $0xa0] sm:$0xff] }
  0x3a   :  { %1118 = vmatprep.subr.bf16.mxu1 %v1117_v8  ;;  %v1091_v17 = vpack.c.bf16 %v84_v15, %v83_v14  ;;  %v132_v19 = vld [vmem:[#allocation2 + $0x198] sm:$0xff]  ;;  %v115_v20 = vld [vmem:[#allocation2 + $0x110] sm:$0xff]  ;;  %v102_v24 = vld [vmem:[#allocation2 + $0xa8] sm:$0xff]  ;;  %1090 = vmatprep.subr.bf16.mxu0 %v1089_v16 }
  0x3b   :  { %1120 = vmatpush3.bf16.msra.mxu1 %v1119_v12  ;;  %v1121_v21 = vpack.c.bf16 %v132_v19, %v131_v18  ;;  %v116_v22 = vld [vmem:[#allocation2 + $0x118] sm:$0xff]  ;;  %v1093_v26 = vpack.c.bf16 %v102_v24, %v101_v23  ;;  %v85_v27 = vld [vmem:[#allocation2 + $0x20] sm:$0xff]  ;;  %v86_v28 = vld [vmem:[#allocation2 + $0x28] sm:$0xff] }
  0x3c   :  { %v1123_v25 = vpack.c.bf16 %v116_v22, %v115_v20  ;;  %v133_v29 = vld [vmem:[#allocation2 + $0x1a0] sm:$0xff]  ;;  %v134_v30 = vld [vmem:[#allocation2 + $0x1a8] sm:$0xff]  ;;  %v1095_v33 = vpack.c.bf16 %v86_v28, %v85_v27  ;;  %v103_v35 = vld [vmem:[#allocation2 + $0xb0] sm:$0xff] }
  0x3d   :  { %1122 = vmatprep.subr.bf16.mxu1 %v1121_v21  ;;  %v117_v31 = vld [vmem:[#allocation2 + $0x120] sm:$0xff]  ;;  %v118_v32 = vld [vmem:[#allocation2 + $0x128] sm:$0xff]  ;;  %1092 = vmatpush3.bf16.msra.mxu0 %v1091_v17  ;;  %v1125_v34 = vpack.c.bf16 %v134_v30, %v133_v29  ;;  %v104_v36 = vld [vmem:[#allocation2 + $0xb8] sm:$0xff] }
  0x3e   :  { %v87_v37 = vld [vmem:[#allocation2 + $0x30] sm:$0xff]  ;;  %1094 = vmatprep.subr.bf16.mxu0 %v1093_v26  ;;  %v1127_v38 = vpack.c.bf16 %v118_v32, %v117_v31  ;;  %v1097_v39 = vpack.c.bf16 %v104_v36, %v103_v35  ;;  %v88_v40 = vld [vmem:[#allocation2 + $0x38] sm:$0xff]  ;;  %v105_v46 = vld [vmem:[#allocation2 + $0xc0] sm:$0xff] }
  0x3f   :  { %1124 = vmatpush3.bf16.msra.mxu1 %v1123_v25  ;;  %v135_v41 = vld [vmem:[#allocation2 + $0x1b0] sm:$0xff]  ;;  %v136_v42 = vld [vmem:[#allocation2 + $0x1b8] sm:$0xff]  ;;  %v106_v47 = vld [vmem:[#allocation2 + $0xc8] sm:$0xff]  ;;  %v1099_v48 = vpack.c.bf16 %v88_v40, %v87_v37 }
  0x40   :  { %1126 = vmatprep.subr.bf16.mxu1 %v1125_v34  ;;  %v1129_v43 = vpack.c.bf16 %v136_v42, %v135_v41  ;;  %v119_v44 = vld [vmem:[#allocation2 + $0x130] sm:$0xff]  ;;  %v120_v45 = vld [vmem:[#allocation2 + $0x138] sm:$0xff]  ;;  %v137_v49 = vld [vmem:[#allocation2 + $0x1c0] sm:$0xff]  ;;  %v1101_v52 = vpack.c.bf16 %v106_v47, %v105_v46 }
  0x41   :  { %1096 = vmatpush3.bf16.msra.mxu0 %v1095_v33  ;;  %v138_v50 = vld [vmem:[#allocation2 + $0x1c8] sm:$0xff]  ;;  %v1131_v51 = vpack.c.bf16 %v120_v45, %v119_v44  ;;  %v89_v53 = vld [vmem:[#allocation2 + $0x40] sm:$0xff]  ;;  %v107_v58 = vld [vmem:[#allocation2 + $0xd0] sm:$0xff] }
  0x42   :  { %1098 = vmatprep.subr.bf16.mxu0 %v1097_v39  ;;  %v90_v54 = vld [vmem:[#allocation2 + $0x48] sm:$0xff]  ;;  %v121_v55 = vld [vmem:[#allocation2 + $0x140] sm:$0xff]  ;;  %v1133_v56 = vpack.c.bf16 %v138_v50, %v137_v49  ;;  %v108_v59 = vld [vmem:[#allocation2 + $0xd8] sm:$0xff] }
  0x43   :  { %1128 = vmatpush3.bf16.msra.mxu1 %v1127_v38  ;;  %v122_v57 = vld [vmem:[#allocation2 + $0x148] sm:$0xff]  ;;  %v139_v60 = vld [vmem:[#allocation2 + $0x1d0] sm:$0xff]  ;;  %v140_v61 = vld [vmem:[#allocation2 + $0x1d8] sm:$0xff]  ;;  %v1103_v62 = vpack.c.bf16 %v90_v54, %v89_v53  ;;  %v1105_v0 = vpack.c.bf16 %v108_v59, %v107_v58 }
  0x44   :  { %1130 = vmatprep.subr.bf16.mxu1 %v1129_v43  ;;  %v1135_v63 = vpack.c.bf16 %v122_v57, %v121_v55  ;;  %v91_v1 = vld [vmem:[#allocation2 + $0x50] sm:$0xff]  ;;  %v92_v2 = vld [vmem:[#allocation2 + $0x58] sm:$0xff]  ;;  %v1137_v4 = vpack.c.bf16 %v140_v61, %v139_v60  ;;  %v109_v6 = vld [vmem:[#allocation2 + $0xe0] sm:$0xff] }
  0x45   :  { %1100 = vmatpush3.bf16.msra.mxu0 %v1099_v48  ;;  %v123_v3 = vld [vmem:[#allocation2 + $0x150] sm:$0xff]  ;;  %v124_v5 = vld [vmem:[#allocation2 + $0x158] sm:$0xff]  ;;  %v110_v7 = vld [vmem:[#allocation2 + $0xe8] sm:$0xff]  ;;  %v1107_v10 = vpack.c.bf16 %v92_v2, %v91_v1 }
  0x46   :  { %1102 = vmatprep.subr.bf16.mxu0 %v1101_v52  ;;  %v141_v8 = vld [vmem:[#allocation2 + $0x1e0] sm:$0xff]  ;;  %v142_v9 = vld [vmem:[#allocation2 + $0x1e8] sm:$0xff]  ;;  %v1139_v13 = vpack.c.bf16 %v124_v5, %v123_v3  ;;  %v1109_v14 = vpack.c.bf16 %v110_v7, %v109_v6  ;;  %v111_v19 = vld [vmem:[#allocation2 + $0xf0] sm:$0xff] }
  0x47   :  { %1132 = vmatpush3.bf16.msra.mxu1 %v1131_v51  ;;  %v93_v11 = vld [vmem:[#allocation2 + $0x60] sm:$0xff]  ;;  %v94_v12 = vld [vmem:[#allocation2 + $0x68] sm:$0xff]  ;;  %v1141_v18 = vpack.c.bf16 %v142_v9, %v141_v8  ;;  %v112_v20 = vld [vmem:[#allocation2 + $0xf8] sm:$0xff] }
  0x48   :  { %1134 = vmatprep.subr.bf16.mxu1 %v1133_v56  ;;  %v125_v15 = vld [vmem:[#allocation2 + $0x160] sm:$0xff]  ;;  %v126_v16 = vld [vmem:[#allocation2 + $0x168] sm:$0xff]  ;;  %v76_v21 = vld [vmem:[%s1587_s0 + $0x18] sm:$0xff]  ;;  %v1111_v24 = vpack.c.bf16 %v94_v12, %v93_v11  ;;  %v1113_v26 = vpack.c.bf16 %v112_v20, %v111_v19 }
  0x49   :  { %1104 = vmatpush3.bf16.msra.mxu0 %v1103_v62  ;;  %v74_v17 = vld [vmem:[%s1587_s0 + $0x8] sm:$0xff]  ;;  %v143_v22 = vld [vmem:[#allocation2 + $0x1f0] sm:$0xff]  ;;  %v144_v23 = vld [vmem:[#allocation2 + $0x1f8] sm:$0xff]  ;;  %350 = vmatprep.mubr.f32.mxu1 %v76_v21  ;;  %v1143_v25 = vpack.c.bf16 %v126_v16, %v125_v15 }
  0x4a   :  { %1106 = vmatprep.subr.bf16.mxu0 %v1105_v0  ;;  %280 = vmatprep.mubr.f32.mxu0 %v74_v17  ;;  %v95_v27 = vld [vmem:[#allocation2 + $0x70] sm:$0xff]  ;;  %v96_v28 = vld [vmem:[#allocation2 + $0x78] sm:$0xff]  ;;  %v1145_v30 = vpack.c.bf16 %v144_v23, %v143_v22  ;;  %v161_v32 = vld [vmem:[#allocation2 + $0x280] sm:$0xff] }
  0x4b   :  { %1136 = vmatpush3.bf16.msra.mxu1 %v1135_v63  ;;  %v127_v29 = vld [vmem:[#allocation2 + $0x170] sm:$0xff]  ;;  %v128_v31 = vld [vmem:[#allocation2 + $0x178] sm:$0xff]  ;;  %v162_v33 = vld [vmem:[#allocation2 + $0x288] sm:$0xff]  ;;  %v1115_v36 = vpack.c.bf16 %v96_v28, %v95_v27 }
  0x4c   :  { %1138 = vmatprep.subr.bf16.mxu1 %v1137_v4  ;;  %v193_v34 = vld [vmem:[#allocation2 + $0x380] sm:$0xff]  ;;  %v194_v35 = vld [vmem:[#allocation2 + $0x388] sm:$0xff]  ;;  %v1147_v37 = vpack.c.bf16 %v128_v31, %v127_v29  ;;  %v1149_v38 = vpack.c.bf16 %v162_v33, %v161_v32  ;;  %v163_v44 = vld [vmem:[#allocation2 + $0x290] sm:$0xff] }
  0x4d   :  { %1108 = vmatpush3.bf16.msra.mxu0 %v1107_v10  ;;  %v145_v39 = vld [vmem:[#allocation2 + $0x200] sm:$0xff]  ;;  %v146_v40 = vld [vmem:[#allocation2 + $0x208] sm:$0xff]  ;;  %v1181_v42 = vpack.c.bf16 %v194_v35, %v193_v34  ;;  %v164_v45 = vld [vmem:[#allocation2 + $0x298] sm:$0xff] }
  0x4e   :  { %1110 = vmatprep.subr.bf16.mxu0 %v1109_v14  ;;  %v177_v41 = vld [vmem:[#allocation2 + $0x300] sm:$0xff]  ;;  %v178_v43 = vld [vmem:[#allocation2 + $0x308] sm:$0xff]  ;;  %v195_v46 = vld [vmem:[#allocation2 + $0x390] sm:$0xff]  ;;  %v1151_v49 = vpack.c.bf16 %v146_v40, %v145_v39  ;;  %v1153_v52 = vpack.c.bf16 %v164_v45, %v163_v44 }
  0x4f   :  { %1140 = vmatpush3.bf16.msra.mxu1 %v1139_v13  ;;  %v196_v47 = vld [vmem:[#allocation2 + $0x398] sm:$0xff]  ;;  %v73_v48 = vld [vmem:[%s1587_s0] sm:$0xff]  ;;  %v75_v50 = vld [vmem:[%s1587_s0 + $0x10] sm:$0xff]  ;;  %v1183_v51 = vpack.c.bf16 %v178_v43, %v177_v41 }
  0x50   :  { %1142 = vmatprep.subr.bf16.mxu1 %v1141_v18  ;;  %v147_v53 = vld [vmem:[#allocation2 + $0x210] sm:$0xff]  ;;  %v148_v54 = vld [vmem:[#allocation2 + $0x218] sm:$0xff]  ;;  %v1185_v56 = vpack.c.bf16 %v196_v47, %v195_v46  ;;  %v165_v58 = vld [vmem:[#allocation2 + $0x2a0] sm:$0xff] }
  0x51   :  { %1112 = vmatpush3.bf16.msra.mxu0 %v1111_v24  ;;  %v179_v55 = vld [vmem:[#allocation2 + $0x310] sm:$0xff]  ;;  %v180_v57 = vld [vmem:[#allocation2 + $0x318] sm:$0xff]  ;;  %v166_v59 = vld [vmem:[#allocation2 + $0x2a8] sm:$0xff]  ;;  %v1155_v62 = vpack.c.bf16 %v148_v54, %v147_v53 }
  0x52   :  { %1114 = vmatprep.subr.bf16.mxu0 %v1113_v26  ;;  %v197_v60 = vld [vmem:[#allocation2 + $0x3a0] sm:$0xff]  ;;  %v198_v61 = vld [vmem:[#allocation2 + $0x3a8] sm:$0xff]  ;;  %v1187_v63 = vpack.c.bf16 %v180_v57, %v179_v55  ;;  %v1157_v0 = vpack.c.bf16 %v166_v59, %v165_v58  ;;  %v167_v6 = vld [vmem:[#allocation2 + $0x2b0] sm:$0xff] }
  0x53   :  { %1144 = vmatpush3.bf16.msra.mxu1 %v1143_v25  ;;  %v149_v1 = vld [vmem:[#allocation2 + $0x220] sm:$0xff]  ;;  %v150_v2 = vld [vmem:[#allocation2 + $0x228] sm:$0xff]  ;;  %v1189_v4 = vpack.c.bf16 %v198_v61, %v197_v60  ;;  %v168_v7 = vld [vmem:[#allocation2 + $0x2b8] sm:$0xff] }
  0x54   :  { %1146 = vmatprep.subr.bf16.mxu1 %v1145_v30  ;;  %v181_v3 = vld [vmem:[#allocation2 + $0x320] sm:$0xff]  ;;  %v182_v5 = vld [vmem:[#allocation2 + $0x328] sm:$0xff]  ;;  %v199_v8 = vld [vmem:[#allocation2 + $0x3b0] sm:$0xff]  ;;  %v1159_v10 = vpack.c.bf16 %v150_v2, %v149_v1  ;;  %v1161_v12 = vpack.c.bf16 %v168_v7, %v167_v6 }
  0x55   :  { %1116 = vmatpush3.bf16.msra.mxu0 %v1115_v36  ;;  %v200_v9 = vld [vmem:[#allocation2 + $0x3b8] sm:$0xff]  ;;  %v1191_v11 = vpack.c.bf16 %v182_v5, %v181_v3  ;;  %v151_v13 = vld [vmem:[#allocation2 + $0x230] sm:$0xff]  ;;  %v169_v18 = vld [vmem:[#allocation2 + $0x2c0] sm:$0xff] }
  0x56   :  { %1150 = vmatprep.subr.bf16.mxu0 %v1149_v38  ;;  %v152_v14 = vld [vmem:[#allocation2 + $0x238] sm:$0xff]  ;;  %v183_v15 = vld [vmem:[#allocation2 + $0x330] sm:$0xff]  ;;  %v1193_v16 = vpack.c.bf16 %v200_v9, %v199_v8  ;;  %v170_v19 = vld [vmem:[#allocation2 + $0x2c8] sm:$0xff] }
  0x57   :  { %1148 = vmatpush3.bf16.msra.mxu1 %v1147_v37  ;;  %v184_v17 = vld [vmem:[#allocation2 + $0x338] sm:$0xff]  ;;  %v201_v20 = vld [vmem:[#allocation2 + $0x3c0] sm:$0xff]  ;;  %v202_v21 = vld [vmem:[#allocation2 + $0x3c8] sm:$0xff]  ;;  %v1163_v22 = vpack.c.bf16 %v152_v14, %v151_v13  ;;  %v1165_v26 = vpack.c.bf16 %v170_v19, %v169_v18 }
  0x58   :  { %1182 = vmatprep.subr.bf16.mxu1 %v1181_v42  ;;  %281 = vmatmul.mubr.f32.vlgmr.msra.gmra.mrb[0].mxu0 %v73_v48  ;;  %v78_v23 = vld [vmem:[%s1587_s0 + $0x28] sm:$0xff]  ;;  %v80_v24 = vld [vmem:[%s1587_s0 + $0x38] sm:$0xff]  ;;  %v1195_v25 = vpack.c.bf16 %v184_v17, %v183_v15  ;;  %v153_v27 = vld [vmem:[#allocation2 + $0x240] sm:$0xff]  ;;  %v1197_v30 = vpack.c.bf16 %v202_v21, %v201_v20 }
  0x59   :  { %1152 = vmatpush3.bf16.msra.mxu0 %v1151_v49  ;;  %v154_v28 = vld [vmem:[#allocation2 + $0x248] sm:$0xff]  ;;  %v185_v29 = vld [vmem:[#allocation2 + $0x340] sm:$0xff]  ;;  %v171_v32 = vld [vmem:[#allocation2 + $0x2d0] sm:$0xff]  ;;  %420 = vmatprep.mubr.f32.mxu0 %v78_v23 }
  0x5a   :  { %351 = vmatmul.mubr.f32.vlgmr.msra.gmra.mrb[0].mxu1 %v75_v50  ;;  %1154 = vmatprep.subr.bf16.mxu0 %v1153_v52  ;;  %v186_v31 = vld [vmem:[#allocation2 + $0x348] sm:$0xff]  ;;  %v172_v33 = vld [vmem:[#allocation2 + $0x2d8] sm:$0xff]  ;;  %v203_v34 = vld [vmem:[#allocation2 + $0x3d0] sm:$0xff]  ;;  %v1167_v36 = vpack.c.bf16 %v154_v28, %v153_v27 }
  0x5b   :  { %1184 = vmatpush3.bf16.msra.mxu1 %v1183_v51  ;;  %v204_v35 = vld [vmem:[#allocation2 + $0x3d8] sm:$0xff]  ;;  %490 = vmatprep.mubr.f32.mxu1 %v80_v24  ;;  %v1199_v37 = vpack.c.bf16 %v186_v31, %v185_v29  ;;  %v1169_v38 = vpack.c.bf16 %v172_v33, %v171_v32  ;;  %v155_v39 = vld [vmem:[#allocation2 + $0x250] sm:$0xff]  ;;  %v173_v44 = vld [vmem:[#allocation2 + $0x2e0] sm:$0xff]  ;;  %v1370_v33 = vmov 0.0  }
  0x5c   :  { %1186 = vmatprep.subr.bf16.mxu1 %v1185_v56  ;;  %v156_v40 = vld [vmem:[#allocation2 + $0x258] sm:$0xff]  ;;  %v187_v41 = vld [vmem:[#allocation2 + $0x350] sm:$0xff]  ;;  %v1201_v42 = vpack.c.bf16 %v204_v35, %v203_v34  ;;  %v174_v45 = vld [vmem:[#allocation2 + $0x2e8] sm:$0xff] }
  0x5d   :  { %1156 = vmatpush3.bf16.msra.mxu0 %v1155_v62  ;;  %v188_v43 = vld [vmem:[#allocation2 + $0x358] sm:$0xff]  ;;  %v205_v46 = vld [vmem:[#allocation2 + $0x3e0] sm:$0xff]  ;;  %v206_v47 = vld [vmem:[#allocation2 + $0x3e8] sm:$0xff]  ;;  %v1171_v48 = vpack.c.bf16 %v156_v40, %v155_v39  ;;  %v1173_v50 = vpack.c.bf16 %v174_v45, %v173_v44 }
  0x5e   :  { %1158 = vmatprep.subr.bf16.mxu0 %v1157_v0  ;;  %v1203_v49 = vpack.c.bf16 %v188_v43, %v187_v41  ;;  %v157_v51 = vld [vmem:[#allocation2 + $0x260] sm:$0xff]  ;;  %v158_v52 = vld [vmem:[#allocation2 + $0x268] sm:$0xff]  ;;  %v1205_v54 = vpack.c.bf16 %v206_v47, %v205_v46  ;;  %v175_v56 = vld [vmem:[#allocation2 + $0x2f0] sm:$0xff] }
  0x5f   :  { %1188 = vmatpush3.bf16.msra.mxu1 %v1187_v63  ;;  %v189_v53 = vld [vmem:[#allocation2 + $0x360] sm:$0xff]  ;;  %v190_v55 = vld [vmem:[#allocation2 + $0x368] sm:$0xff]  ;;  %v176_v57 = vld [vmem:[#allocation2 + $0x2f8] sm:$0xff]  ;;  %v1175_v60 = vpack.c.bf16 %v158_v52, %v157_v51 }
  0x60   :  { %1190 = vmatprep.subr.bf16.mxu1 %v1189_v4  ;;  %v207_v58 = vld [vmem:[#allocation2 + $0x3f0] sm:$0xff]  ;;  %v208_v59 = vld [vmem:[#allocation2 + $0x3f8] sm:$0xff]  ;;  %v1207_v61 = vpack.c.bf16 %v190_v55, %v189_v53  ;;  %v1177_v62 = vpack.c.bf16 %v176_v57, %v175_v56  ;;  %v77_v6 = vld [vmem:[%s1587_s0 + $0x20] sm:$0xff] }
  0x61   :  { %1160 = vmatpush3.bf16.msra.mxu0 %v1159_v10  ;;  %v159_v63 = vld [vmem:[#allocation2 + $0x270] sm:$0xff]  ;;  %v160_v0 = vld [vmem:[#allocation2 + $0x278] sm:$0xff]  ;;  %v1209_v1 = vpack.c.bf16 %v208_v59, %v207_v58  ;;  %v497_v8 = vld [vmem:[%s1590_s3] sm:$0xff] }
  0x62   :  { %1162 = vmatprep.subr.bf16.mxu0 %v1161_v12  ;;  %v191_v2 = vld [vmem:[#allocation2 + $0x370] sm:$0xff]  ;;  %v192_v3 = vld [vmem:[#allocation2 + $0x378] sm:$0xff]  ;;  %v1179_v4 = vpack.c.bf16 %v160_v0, %v159_v63  ;;  %v498_v9 = vld [vmem:[%s1590_s3 + $0x8] sm:$0xff] }
  0x63   :  { %1192 = vmatpush3.bf16.msra.mxu1 %v1191_v11  ;;  %v1211_v5 = vpack.c.bf16 %v192_v3, %v191_v2  ;;  %v79_v7 = vld [vmem:[%s1587_s0 + $0x30] sm:$0xff]  ;;  %v1368_v11 = vmov 0.0|0.0   ;;  %v1214_v12 = vpack.c.bf16 %v498_v9, %v497_v8  ;;  %v500_v13 = vld [vmem:[%s1590_s3 + $0x18] sm:$0xff]  ;;  %v501_v15 = vld [vmem:[%s1590_s3 + $0x20] sm:$0xff] }
  0x64   :  { %1194 = vmatprep.subr.bf16.mxu1 %v1193_v16  ;;  %v499_v10 = vld [vmem:[%s1590_s3 + $0x10] sm:$0xff]  ;;  %v502_v16 = vld [vmem:[%s1590_s3 + $0x28] sm:$0xff]  ;;  %v504_v19 = vld [vmem:[%s1590_s3 + $0x38] sm:$0xff] }
  0x65   :  { %1164 = vmatpush3.bf16.msra.mxu0 %v1163_v22  ;;  %v1217_v14 = vpack.c.bf16 %v500_v13, %v499_v10  ;;  %v1220_v17 = vpack.c.bf16 %v502_v16, %v501_v15  ;;  %v503_v18 = vld [vmem:[%s1590_s3 + $0x30] sm:$0xff]  ;;  %v505_v21 = vld [vmem:[%s1590_s3 + $0x40] sm:$0xff]  ;;  %v506_v22 = vld [vmem:[%s1590_s3 + $0x48] sm:$0xff] }
  0x66   :  { %1166 = vmatprep.subr.bf16.mxu0 %v1165_v26  ;;  %v1223_v20 = vpack.c.bf16 %v504_v19, %v503_v18  ;;  %v1226_v23 = vpack.c.bf16 %v506_v22, %v505_v21  ;;  %v507_v24 = vld [vmem:[%s1590_s3 + $0x50] sm:$0xff]  ;;  %v509_v27 = vld [vmem:[%s1590_s3 + $0x60] sm:$0xff]  ;;  %v510_v28 = vld [vmem:[%s1590_s3 + $0x68] sm:$0xff] }
  0x67   :  { %1196 = vmatpush3.bf16.msra.mxu1 %v1195_v25  ;;  %v508_v25 = vld [vmem:[%s1590_s3 + $0x58] sm:$0xff]  ;;  %v1232_v29 = vpack.c.bf16 %v510_v28, %v509_v27  ;;  %v591_v34 = vld [vmem:[#allocation4] sm:$0xff]  ;;  %v592_v35 = vld [vmem:[#allocation4 + $0x8] sm:$0xff] }
  0x68   :  { %1198 = vmatprep.subr.bf16.mxu1 %v1197_v30  ;;  %v1229_v26 = vpack.c.bf16 %v508_v25, %v507_v24  ;;  %v511_v30 = vld [vmem:[%s1590_s3 + $0x70] sm:$0xff]  ;;  %v512_v31 = vld [vmem:[%s1590_s3 + $0x78] sm:$0xff]  ;;  %v595_v40 = vld [vmem:[#allocation4 + $0x20] sm:$0xff] }
  0x69   :  { %1168 = vmatpush3.bf16.msra.mxu0 %v1167_v36  ;;  %v1235_v32 = vpack.c.bf16 %v512_v31, %v511_v30  ;;  %v593_v36 = vld [vmem:[#allocation4 + $0x10] sm:$0xff]  ;;  %v596_v41 = vld [vmem:[#allocation4 + $0x28] sm:$0xff]  ;;  %v598_v44 = vld [vmem:[#allocation4 + $0x38] sm:$0xff] }
  0x6a   :  { %1170 = vmatprep.subr.bf16.mxu0 %v1169_v38  ;;  %v594_v38 = vld [vmem:[#allocation4 + $0x18] sm:$0xff]  ;;  %v597_v43 = vld [vmem:[#allocation4 + $0x30] sm:$0xff]  ;;  %v599_v46 = vld [vmem:[#allocation4 + $0x40] sm:$0xff] }
  0x6b   :  { %1200 = vmatpush3.bf16.msra.mxu1 %v1199_v37  ;;  %v1238_v37 = vpack.c.bf16 %v592_v35, %v591_v34  ;;  %v1241_v39 = vpack.c.bf16 %v594_v38, %v593_v36  ;;  %v1247_v45 = vpack.c.bf16 %v598_v44, %v597_v43  ;;  %v600_v47 = vld [vmem:[#allocation4 + $0x48] sm:$0xff]  ;;  %v603_v52 = vld [vmem:[#allocation4 + $0x60] sm:$0xff]  ;;  %v605_v9 = vld [vmem:[#allocation4 + $0x70] sm:$0xff] }
  0x6c   :  { %1202 = vmatprep.subr.bf16.mxu1 %v1201_v42  ;;  %v1244_v42 = vpack.c.bf16 %v596_v41, %v595_v40  ;;  %v604_v53 = vld [vmem:[#allocation4 + $0x68] sm:$0xff]  ;;  %v785_v56 = vld [vmem:[%s1589_s2] ss:$0 sm:$0xff]  ;;  %v606_v10 = vld [vmem:[#allocation4 + $0x78] sm:$0xff] }
  0x6d   :  { %1172 = vmatpush3.bf16.msra.mxu0 %v1171_v48  ;;  %v1250_v48 = vpack.c.bf16 %v600_v47, %v599_v46  ;;  %v685_v13 = vld [vmem:[#allocation6] sm:$0xff]  ;;  %v687_v15 = vld [vmem:[#allocation6 + $0x10] sm:$0xff]  ;;  %v700_v40 = vld [vmem:[#allocation6 + $0x78] sm:$0xff] }
  0x6e   :  { %1174 = vmatprep.subr.bf16.mxu0 %v1173_v50  ;;  %v602_v50 = vld [vmem:[#allocation4 + $0x58] sm:$0xff]  ;;  %v689_v19 = vld [vmem:[#allocation6 + $0x20] sm:$0xff]  ;;  %v691_v22 = vld [vmem:[#allocation6 + $0x30] sm:$0xff] }
  0x6f   :  { %1204 = vmatpush3.bf16.msra.mxu1 %v1203_v49  ;;  %v601_v49 = vld [vmem:[#allocation4 + $0x50] sm:$0xff]  ;;  %v693_v25 = vld [vmem:[#allocation6 + $0x40] sm:$0xff] }
  0x70   :  { %1206 = vmatprep.subr.bf16.mxu1 %v1205_v54  ;;  %v1253_v51 = vpack.c.bf16 %v602_v50, %v601_v49  ;;  %v1256_v54 = vpack.c.bf16 %v604_v53, %v603_v52  ;;  %v695_v28 = vld [vmem:[#allocation6 + $0x50] sm:$0xff]  ;;  %v697_v31 = vld [vmem:[#allocation6 + $0x60] sm:$0xff] }
  0x71   :  { %1176 = vmatpush3.bf16.msra.mxu0 %v1175_v60  ;;  %v786_v34 = vld [vmem:[%s1591_s4] ss:$0 sm:$0xff] }
  0x72   :  { %1178 = vmatprep.subr.bf16.mxu0 %v1177_v62  ;;  %v788_v46 = vld [vmem:[%s1595_s8] ss:$0 sm:$0xff] }
  0x73   :  { %1208 = vmatpush3.bf16.msra.mxu1 %v1207_v61 }
  0x74   :  { %1210 = vmatprep.subr.bf16.mxu1 %v1209_v1 }
  0x75   :  { %1180 = vmatpush3.bf16.msra.mxu0 %v1179_v4 }
  0x76   :  { %1213 = vmatprep.subr.bf16.mxu0 %v1368_v11 }
  0x77   :  { %1212 = vmatpush3.bf16.msra.mxu1 %v1211_v5 }
  0x78   :  { %421 = vmatmul.mubr.f32.vlgmr.msra.gmra.mrb[2].mxu0 %v77_v6  ;;  %1237 = vmatprep.subr.bf16.mxu1 %v1368_v11 }
  0x79   :  { %1215 = vmatpush3.bf16.msra.mxu0 %v1214_v12  ;;  %1012 = vmatprep.mubr.msk.f32.mxu0 %vm1369_vm0, %v1370_v33  ;;  %v1259_v12 = vpack.c.bf16 %v606_v10, %v605_v9 }
  0x7a   :  { %491 = vmatmul.mubr.f32.vlgmr.msra.gmra.mrb[2].mxu1 %v79_v7  ;;  %1216 = vmatprep.subr.bf16.mxu0 %v1368_v11 }
  0x7b   :  { %1047 = vmatprep.mubr.msk.f32.mxu1 %vm1369_vm0, %v1370_v33  ;;  %1239 = vmatpush3.bf16.msra.mxu1 %v1238_v37 }
  0x7c   :  { %1240 = vmatprep.subr.bf16.mxu1 %v1368_v11 }
  0x7d   :  { %1218 = vmatpush3.bf16.msra.mxu0 %v1217_v14  ;;  %v686_v14 = vld [vmem:[#allocation6 + $0x8] sm:$0xff] }
  0x7e   :  { %1219 = vmatprep.subr.bf16.mxu0 %v1368_v11  ;;  %v1262_v16 = vpack.c.bf16 %v686_v14, %v685_v13 }
  0x7f   :  { %1242 = vmatpush3.bf16.msra.mxu1 %v1241_v39  ;;  %v699_v39 = vld [vmem:[#allocation6 + $0x70] sm:$0xff] }
  0x80   :  { %1243 = vmatprep.subr.bf16.mxu1 %v1368_v11  ;;  %v1283_v41 = vpack.c.bf16 %v700_v40, %v699_v39 }
  0x81   :  { %1221 = vmatpush3.bf16.msra.mxu0 %v1220_v17  ;;  %v688_v17 = vld [vmem:[#allocation6 + $0x18] sm:$0xff] }
  0x82   :  { %1222 = vmatprep.subr.bf16.mxu0 %v1368_v11  ;;  %v1265_v18 = vpack.c.bf16 %v688_v17, %v687_v15 }
  0x83   :  { %1245 = vmatpush3.bf16.msra.mxu1 %v1244_v42  ;;  %v787_v42 = vld [vmem:[%s1593_s6] ss:$0 sm:$0xff] }
  0x84   :  { %1246 = vmatprep.subr.bf16.mxu1 %v1368_v11 }
  0x85   :  { %1224 = vmatpush3.bf16.msra.mxu0 %v1223_v20  ;;  %v690_v20 = vld [vmem:[#allocation6 + $0x28] sm:$0xff] }
  0x86   :  { %1225 = vmatprep.subr.bf16.mxu0 %v1368_v11  ;;  %v1268_v21 = vpack.c.bf16 %v690_v20, %v689_v19 }
  0x87   :  { %1248 = vmatpush3.bf16.msra.mxu1 %v1247_v45 }
  0x88   :  { %1249 = vmatprep.subr.bf16.mxu1 %v1368_v11 }
  0x89   :  { %1227 = vmatpush3.bf16.msra.mxu0 %v1226_v23  ;;  %v692_v23 = vld [vmem:[#allocation6 + $0x38] sm:$0xff] }
  0x8a   :  { %1228 = vmatprep.subr.bf16.mxu0 %v1368_v11  ;;  %v1271_v24 = vpack.c.bf16 %v692_v23, %v691_v22 }
  0x8b   :  { %1251 = vmatpush3.bf16.msra.mxu1 %v1250_v48 }
  0x8c   :  { %1252 = vmatprep.subr.bf16.mxu1 %v1368_v11 }
  0x8d   :  { %1230 = vmatpush3.bf16.msra.mxu0 %v1229_v26  ;;  %v694_v26 = vld [vmem:[#allocation6 + $0x48] sm:$0xff] }
  0x8e   :  { %1231 = vmatprep.subr.bf16.mxu0 %v1368_v11  ;;  %v1274_v27 = vpack.c.bf16 %v694_v26, %v693_v25 }
  0x8f   :  { %1254 = vmatpush3.bf16.msra.mxu1 %v1253_v51 }
  0x90   :  { %1255 = vmatprep.subr.bf16.mxu1 %v1368_v11 }
  0x91   :  { %1233 = vmatpush3.bf16.msra.mxu0 %v1232_v29  ;;  %v696_v29 = vld [vmem:[#allocation6 + $0x58] sm:$0xff] }
  0x92   :  { %1234 = vmatprep.subr.bf16.mxu0 %v1368_v11  ;;  %v1277_v30 = vpack.c.bf16 %v696_v29, %v695_v28 }
  0x93   :  { %1257 = vmatpush3.bf16.msra.mxu1 %v1256_v54 }
  0x94   :  { %1258 = vmatprep.subr.bf16.mxu1 %v1368_v11 }
  0x95   :  { %1236 = vmatpush3.bf16.msra.mxu0 %v1235_v32  ;;  %v698_v32 = vld [vmem:[#allocation6 + $0x68] sm:$0xff] }
  0x96   :  { %1261 = vmatprep.subr.bf16.mxu0 %v1368_v11 }
  0x97   :  { %1260 = vmatpush3.bf16.msra.mxu1 %v1259_v12 }
 0x12b   :  { %v821_v55 = vpop.f32.mrb[0].mxu0 }
 0x12c   :  { %v822_v57 = vpop.f32.mrb[1].mxu0 }
 0x12d   :  { %v856_v58 = vpop.f32.mrb[0].mxu1  ;;  %v823_v59 = vadd.f32 %v822_v57, %v821_v55 }
 0x12e   :  { %v857_v60 = vpop.f32.mrb[1].mxu1 }
 0x12f   :  { %v858_v61 = vadd.f32 %v857_v60, %v856_v58  ;;  %v283_v62 = vadd.f32 %v823_v59, %v785_v56 }
 0x131   :  { %v353_v63 = vadd.f32 %v858_v61, %v283_v62 }
 0x14b   :  { %v891_v0 = vpop.f32.mrb[2].mxu0 }
 0x14c   :  { %v892_v1 = vpop.f32.mrb[3].mxu0 }
 0x14d   :  { %v926_v2 = vpop.f32.mrb[2].mxu1  ;;  %v893_v3 = vadd.f32 %v892_v1, %v891_v0 }
 0x14e   :  { %v927_v4 = vpop.f32.mrb[3].mxu1 }
 0x14f   :  { %v928_v5 = vadd.f32 %v927_v4, %v926_v2  ;;  %v423_v6 = vadd.f32 %v893_v3, %v353_v63 }
 0x151   :  { %v493_v7 = vadd.f32 %v928_v5, %v423_v6 }
 0x153   :  { %v496_v8 = vmax.f32 %v493_v7, 0.0 }
 0x155   :  { %1013 = vmatmul.mubr.f32.vlgmr.msra.gmra.mrb[4].mxu0 %v496_v8 }
 0x156   :  { %1082 = vmatprep.mubr.msk.f32.mxu0 %vm1369_vm0, %v1370_v33  ;;  %1263 = vmatpush3.bf16.msra.mxu0 %v1262_v16  ;;  %v1280_v33 = vpack.c.bf16 %v698_v32, %v697_v31 }
 0x157   :  { %1264 = vmatprep.subr.bf16.mxu0 %v1368_v11 }
 0x15a   :  { %1266 = vmatpush3.bf16.msra.mxu0 %v1265_v18 }
 0x15b   :  { %1267 = vmatprep.subr.bf16.mxu0 %v1368_v11 }
 0x15e   :  { %1269 = vmatpush3.bf16.msra.mxu0 %v1268_v21 }
 0x15f   :  { %1270 = vmatprep.subr.bf16.mxu0 %v1368_v11 }
 0x162   :  { %1272 = vmatpush3.bf16.msra.mxu0 %v1271_v24 }
 0x163   :  { %1273 = vmatprep.subr.bf16.mxu0 %v1368_v11 }
 0x166   :  { %1275 = vmatpush3.bf16.msra.mxu0 %v1274_v27 }
 0x167   :  { %1276 = vmatprep.subr.bf16.mxu0 %v1368_v11 }
 0x16a   :  { %1278 = vmatpush3.bf16.msra.mxu0 %v1277_v30 }
 0x16b   :  { %1279 = vmatprep.subr.bf16.mxu0 %v1368_v11 }
 0x16e   :  { %1281 = vmatpush3.bf16.msra.mxu0 %v1280_v33 }
 0x16f   :  { %1282 = vmatprep.subr.bf16.mxu0 %v1368_v11 }
 0x172   :  { %1284 = vmatpush3.bf16.msra.mxu0 %v1283_v41 }
 0x228   :  { %v586_v35 = vpop.f32.mrb[4].mxu0 }
 0x229   :  { %v587_v36 = vadd.f32 %v786_v34, %v586_v35  ;;  %v1014_v37 = vpop.f32.mrb[5].mxu0 }
 0x22b   :  { %v590_v38 = vmax.f32 %v587_v36, 0.0 }
 0x22d   :  { %1048 = vmatmul.mubr.f32.vlgmr.msra.gmra.mrb[4].mxu1 %v590_v38 }
 0x300   :  { %v680_v43 = vpop.f32.mrb[4].mxu1 }
 0x301   :  { %v681_v44 = vadd.f32 %v787_v42, %v680_v43  ;;  %v1049_v11 = vpop.f32.mrb[5].mxu1 }
 0x303   :  { %v684_v45 = vmax.f32 %v681_v44, 0.0 }
 0x305   :  { %1083 = vmatmul.mubr.f32.vlgmr.msra.gmra.mrb[6].mxu0 %v684_v45 }
 0x3d8   :  { %v774_v47 = vpop.f32.mrb[6].mxu0 }
 0x3d9   :  { %v775_v48 = vadd.f32 %v788_v46, %v774_v47  ;;  %v1084_v49 = vpop.f32.mrb[7].mxu0 }
 0x3db   :  { %778 = vst [vmem:[%s1596_s9] sm:$0xff] %v775_v48 }
 0x3dc   :  { %783 = vsyncpa [#allocation3], 1 }
 0x3dd   :  { %784 = vsyncpa [#allocation5], 1 }

</bundles_post_ra>
